<compile_context>
chip_gen: v5e
topology: v5e:2x2
jax: 0.10.0
libtpu: 0.0.40
codegen_flags: <defaults>
</compile_context>

<pallas_src>
import functools

import jax
import jax.numpy as jnp
from jax import lax
from jax.experimental import pallas as pl
from jax.experimental.pallas import tpu as pltpu


_ROW_TILE = 256          # LHS row tile for the large-N path
_ROW_TILE_MIN_N = 512    # row-tile only when N >= this (and divisible)
_VMEM_RESERVE = 2 << 20  # headroom inside the scoped limit


# ----------------------------------------------------------------------------
# VMEM / tiling planning
# ----------------------------------------------------------------------------
def _vmem_limit_bytes():
    """Generation-aware scoped-VMEM limit: ~56 MiB on v7x (64 MiB physical),
    ~100 MiB on v5e/v6e (128 MiB physical)."""
    try:
        cap = int(pltpu.get_tpu_info().vmem_capacity_bytes)
    except Exception:
        cap = 64 << 20          # conservative fallback: v7x per-core VMEM
    cap = max(cap, 32 << 20)
    return min(cap - (8 << 20), 100 << 20)


def _cdiv(a, b):
    return (a + b - 1) // b


def _round_up(x, m):
    return _cdiv(x, m) * m


def _plan_k(K, rows_per_step, itemsize, tile_budget, max_tk=None):
    """Pick the K tile size.  Returns (tk, num_steps, k_last_valid).

    rows_per_step = feature rows DMA'd per K step (N, or tm+N when row-tiled).
    Double buffering is assumed.  Over-coverage of the last tile is < 128
    columns and is masked in-kernel (no HBM padding pass)."""
    budget_tk = max(tile_budget, 0) // (2 * rows_per_step * itemsize)
    if max_tk is not None:
        budget_tk = min(budget_tk, max_tk)
    if K <= max(budget_tk, 128):
        # Whole K fits: block K-dim == full array dim -> no alignment, no mask.
        return K, 1, K
    budget_tk = max(128, (budget_tk // 128) * 128)
    steps = _cdiv(K, budget_tk)
    tk = _round_up(_cdiv(K, steps), 128)
    steps = _cdiv(K, tk)
    k_last = K - (steps - 1) * tk
    return tk, steps, k_last


def _compiler_params(semantics, vmem_limit):
    return pltpu.CompilerParams(
        dimension_semantics=semantics,
        vmem_limit_bytes=vmem_limit,
    )


def _features(x):
    """NCHW -> (N, K) view.  No dtype cast, no padding (both cost HBM passes)."""
    a, b, c, d = x.shape
    N, K = a * b, c * d
    return x.reshape(N, K), N, K


def _precision_for(dtype):
    # Exact-f32 gram (matches the PyTorch f32 reference); bf16 inputs use the
    # native single-pass MXU path.
    return lax.Precision.HIGHEST if dtype == jnp.float32 else lax.Precision.DEFAULT


# ----------------------------------------------------------------------------
# Kernel helpers
# ----------------------------------------------------------------------------
def _mask_k_tail(x, k_step, num_steps, tk, k_last):
    """Zero out-of-range K lanes of the (possibly partial) last tile.

    Pallas does not guarantee zero-fill of partial edge blocks, and padding in
    the wrapper would cost a full extra HBM read+write of the feature map."""
    limit = jnp.where(k_step == num_steps - 1, k_last, tk)
    col = lax.broadcasted_iota(jnp.int32, x.shape, x.ndim - 1)
    return jnp.where(col < limit, x, jnp.zeros_like(x))


def _self_gram(f, precision):
    # F @ F.T without materializing a transpose: contract axis 1 of both.
    return lax.dot_general(f, f, (((1,), (1,)), ((), ())),
                           preferred_element_type=jnp.float32,
                           precision=precision)


def _cross_gram(l, r, precision):
    return lax.dot_general(l, r, (((1,), (1,)), ((), ())),
                           preferred_element_type=jnp.float32,
                           precision=precision)


# ----------------------------------------------------------------------------
# Kernels — small-N path (single row tile, feature contracted with itself)
# ----------------------------------------------------------------------------
def _gram_kernel(feat_ref, g_ref, *, inv_norm, tk, k_last, precision):
    k = pl.program_id(0)
    nk = pl.num_programs(0)

    @pl.when(k == 0)
    def _():
        g_ref[...] = jnp.zeros_like(g_ref)

    f = feat_ref[...]
    if k_last != tk:                      # ragged K tail handled in-kernel
        f = _mask_k_tail(f, k, nk, tk, k_last)
    g = _self_gram(f, precision)

    @pl.when(k < nk - 1)
    def _():
        g_ref[...] += g

    @pl.when(k == nk - 1)
    def _():
        # 1/(N*K) folded into the final accumulate (no extra RMW pass).
        g_ref[...] = (g_ref[...] + g) * inv_norm


def _loss_kernel(feat_ref, tgt_ref, loss_ref, acc_ref,
                 *, inv_norm, inv_nn, tk, k_last, precision):
    """Fused gram + MSE-vs-target.  Only the scalar loss leaves VMEM."""
    k = pl.program_id(0)
    nk = pl.num_programs(0)

    @pl.when(k == 0)
    def _():
        acc_ref[...] = jnp.zeros_like(acc_ref)

    f = feat_ref[...]
    if k_last != tk:
        f = _mask_k_tail(f, k, nk, tk, k_last)
    acc_ref[...] += _self_gram(f, precision)

    @pl.when(k == nk - 1)
    def _():
        diff = acc_ref[...] * inv_norm - tgt_ref[...]
        loss_ref[0, 0] = jnp.sum(diff * diff) * inv_nn


# ----------------------------------------------------------------------------
# Kernels — large-N path (parallel output-row tiles; LHS row block x full-N RHS)
# ----------------------------------------------------------------------------
def _gram_kernel_rows(lhs_ref, rhs_ref, g_ref, *, inv_norm, tk, k_last, precision):
    k = pl.program_id(1)
    nk = pl.num_programs(1)

    @pl.when(k == 0)
    def _():
        g_ref[...] = jnp.zeros_like(g_ref)

    l = lhs_ref[...]
    r = rhs_ref[...]
    if k_last != tk:
        l = _mask_k_tail(l, k, nk, tk, k_last)
        r = _mask_k_tail(r, k, nk, tk, k_last)
    g = _cross_gram(l, r, precision)

    @pl.when(k < nk - 1)
    def _():
        g_ref[...] += g

    @pl.when(k == nk - 1)
    def _():
        g_ref[...] = (g_ref[...] + g) * inv_norm


def _loss_kernel_rows(lhs_ref, rhs_ref, tgt_ref, part_ref, acc_ref,
                      *, inv_norm, inv_nn, tk, k_last, precision):
    k = pl.program_id(1)
    nk = pl.num_programs(1)

    @pl.when(k == 0)
    def _():
        acc_ref[...] = jnp.zeros_like(acc_ref)

    l = lhs_ref[...]
    r = rhs_ref[...]
    if k_last != tk:
        l = _mask_k_tail(l, k, nk, tk, k_last)
        r = _mask_k_tail(r, k, nk, tk, k_last)
    acc_ref[...] += _cross_gram(l, r, precision)

    @pl.when(k == nk - 1)
    def _():
        diff = acc_ref[...] * inv_norm - tgt_ref[...]
        partial = jnp.sum(diff * diff) * inv_nn
        # Lane-dense (1,8,128) store of the per-row-tile partial loss; the tiny
        # cross-tile sum happens in the wrapper.
        part_ref[...] = jnp.full(part_ref.shape, partial, dtype=part_ref.dtype)


# ----------------------------------------------------------------------------
# Wrappers
# ----------------------------------------------------------------------------
def _use_row_tiling(N):
    return N >= _ROW_TILE_MIN_N and N % _ROW_TILE == 0


def gram_matrix(x, *, _max_tk=None):
    """Pallas gram matrix, matches torch gram_matrix() semantics (f32 output)."""
    feat, N, K = _features(x)
    itemsize = feat.dtype.itemsize
    inv_norm = 1.0 / float(N * K)
    precision = _precision_for(feat.dtype)
    vmem_limit = _vmem_limit_bytes()

    if not _use_row_tiling(N):
        resident = 2 * N * N * 4                       # (N,N) output, 2 buffers
        tile_budget = vmem_limit - resident - _VMEM_RESERVE
        tk, steps, k_last = _plan_k(K, N, itemsize, tile_budget, _max_tk)
        kern = functools.partial(_gram_kernel, inv_norm=inv_norm, tk=tk,
                                 k_last=k_last, precision=precision)
        return pl.pallas_call(
            kern,
            out_shape=jax.ShapeDtypeStruct((N, N), jnp.float32),
            grid_spec=pltpu.PrefetchScalarGridSpec(
                num_scalar_prefetch=0,
                grid=(steps,),
                in_specs=[pl.BlockSpec((N, tk), lambda k: (0, k))],
                out_specs=pl.BlockSpec((N, N), lambda k: (0, 0)),
            ),
            compiler_params=_compiler_params(("arbitrary",), vmem_limit),
        )(feat)

    tm = _ROW_TILE
    resident = 2 * tm * N * 4                          # (tm,N) output, 2 buffers
    tile_budget = vmem_limit - resident - _VMEM_RESERVE
    tk, steps, k_last = _plan_k(K, tm + N, itemsize, tile_budget, _max_tk)
    kern = functools.partial(_gram_kernel_rows, inv_norm=inv_norm, tk=tk,
                             k_last=k_last, precision=precision)
    return pl.pallas_call(
        kern,
        out_shape=jax.ShapeDtypeStruct((N, N), jnp.float32),
        grid_spec=pltpu.PrefetchScalarGridSpec(
            num_scalar_prefetch=0,
            grid=(N // tm, steps),
            in_specs=[pl.BlockSpec((tm, tk), lambda i, k: (i, k)),   # LHS rows
                      pl.BlockSpec((N, tk), lambda i, k: (0, k))],   # RHS full
            out_specs=pl.BlockSpec((tm, N), lambda i, k: (i, 0)),
        ),
        compiler_params=_compiler_params(("parallel", "arbitrary"), vmem_limit),
    )(feat, feat)


def style_loss_forward(x, target_gram, *, _max_tk=None):
    """Returns (input_unchanged, mse_loss(gram_matrix(x), target_gram))."""
    feat, N, K = _features(x)
    itemsize = feat.dtype.itemsize
    inv_norm = 1.0 / float(N * K)
    inv_nn = 1.0 / float(N * N)
    precision = _precision_for(feat.dtype)
    vmem_limit = _vmem_limit_bytes()
    target_gram = target_gram.astype(jnp.float32)

    if not _use_row_tiling(N):
        # Residents: (N,N) acc scratch + double-buffered (N,N) target.
        resident = N * N * 4 + 2 * N * N * 4
        tile_budget = vmem_limit - resident - _VMEM_RESERVE
        tk, steps, k_last = _plan_k(K, N, itemsize, tile_budget, _max_tk)
        kern = functools.partial(_loss_kernel, inv_norm=inv_norm, inv_nn=inv_nn,
                                 tk=tk, k_last=k_last, precision=precision)
        loss = pl.pallas_call(
            kern,
            out_shape=jax.ShapeDtypeStruct((1, 1), jnp.float32),
            grid_spec=pltpu.PrefetchScalarGridSpec(
                num_scalar_prefetch=0,
                grid=(steps,),
                in_specs=[pl.BlockSpec((N, tk), lambda k: (0, k)),
                          pl.BlockSpec((N, N), lambda k: (0, 0))],
                out_specs=pl.BlockSpec(memory_space=pltpu.SMEM),
                scratch_shapes=[pltpu.VMEM((N, N), jnp.float32)],
            ),
            compiler_params=_compiler_params(("arbitrary",), vmem_limit),
        )(feat, target_gram)
        return x, loss[0, 0]

    tm = _ROW_TILE
    n_rows = N // tm
    resident = tm * N * 4 + 2 * tm * N * 4
    tile_budget = vmem_limit - resident - _VMEM_RESERVE
    tk, steps, k_last = _plan_k(K, tm + N, itemsize, tile_budget, _max_tk)
    kern = functools.partial(_loss_kernel_rows, inv_norm=inv_norm, inv_nn=inv_nn,
                             tk=tk, k_last=k_last, precision=precision)
    partials = pl.pallas_call(
        kern,
        out_shape=jax.ShapeDtypeStruct((n_rows, 8, 128), jnp.float32),
        grid_spec=pltpu.PrefetchScalarGridSpec(
            num_scalar_prefetch=0,
            grid=(n_rows, steps),
            in_specs=[pl.BlockSpec((tm, tk), lambda i, k: (i, k)),
                      pl.BlockSpec((N, tk), lambda i, k: (0, k)),
                      pl.BlockSpec((tm, N), lambda i, k: (i, 0))],
            out_specs=pl.BlockSpec((1, 8, 128), lambda i, k: (i, 0, 0)),
            scratch_shapes=[pltpu.VMEM((tm, N), jnp.float32)],
        ),
        compiler_params=_compiler_params(("parallel", "arbitrary"), vmem_limit),
    )(feat, feat, target_gram)
    # Tiny cross-row-tile reduction outside the kernel (n_rows scalars).
    return x, jnp.sum(partials[:, 0, 0])


class StyleLoss:
    """JAX/Pallas equivalent of the PyTorch StyleLoss module."""

    def __init__(self, target_feature):
        # Target gram computed once at construction (detached constant).
        self.target = gram_matrix(target_feature)
        self.loss = None

    def __call__(self, x):
        out, self.loss = style_loss_forward(x, self.target)
        return out


# ----------------------------------------------------------------------------
# Demo / self-check
# ----------------------------------------------------------------------------
if __name__ == "__main__":
    import numpy as np

    key = jax.random.PRNGKey(0)
    keys = jax.random.split(key, 6)

    def gram_ref(t):
        t = np.asarray(t, dtype=np.float64)
        a, b, c, d = t.shape
        f = t.reshape(a * b, c * d)
        return (f @ f.T) / float(a * b * c * d)

    def loss_ref(xv, tf):
        return float(np.mean((gram_ref(xv) - gram_ref(tf)) ** 2))

    # 1) Small-N module path: N=8, K=256 (single full-K block, no mask).
    tf1 = jax.random.normal(keys[0], (2, 4, 16, 16), dtype=jnp.float32)
    x1 = jax.random.normal(keys[1], (2, 4, 16, 16), dtype=jnp.float32)
    m1 = StyleLoss(tf1)
    out1 = jax.block_until_ready(m1(x1))
    l1 = float(jax.block_until_ready(m1.loss))
    assert out1.shape == x1.shape and out1.dtype == x1.dtype
    assert bool(jnp.allclose(out1, x1)), "forward must return input unchanged"
    assert np.allclose(l1, loss_ref(x1, tf1), rtol=1e-3, atol=1e-9), \
        f"loss mismatch: {l1} vs {loss_ref(x1, tf1)}"

    # 2) Ragged K = 130 (not 128-aligned): full-K block, no padding / no mask.
    tf2 = jax.random.normal(keys[2], (2, 4, 10, 13), dtype=jnp.float32)
    x2 = jax.random.normal(keys[3], (2, 4, 10, 13), dtype=jnp.float32)
    m2 = StyleLoss(tf2)
    out2 = jax.block_until_ready(m2(x2))
    l2 = float(jax.block_until_ready(m2.loss))
    assert bool(jnp.allclose(out2, x2))
    assert np.allclose(l2, loss_ref(x2, tf2), rtol=1e-3, atol=1e-9), \
        f"ragged-K loss mismatch: {l2} vs {loss_ref(x2, tf2)}"

    # 2b) Same shapes, forced multi-step K -> exercises the in-kernel tail mask.
    g2 = jax.block_until_ready(gram_matrix(x2, _max_tk=128))
    assert np.allclose(np.asarray(g2), gram_ref(x2), rtol=1e-4, atol=1e-6)
    _, l2b = style_loss_forward(x2, m2.target, _max_tk=128)
    l2b = float(jax.block_until_ready(l2b))
    assert np.allclose(l2b, loss_ref(x2, tf2), rtol=1e-3, atol=1e-9), \
        f"masked-tail loss mismatch: {l2b} vs {loss_ref(x2, tf2)}"

    # 3) Large-N row-tiled path: N=512, K=144 (parallel output-row axis).
    tf3 = jax.random.normal(keys[4], (2, 256, 12, 12), dtype=jnp.float32)
    x3 = jax.random.normal(keys[5], (2, 256, 12, 12), dtype=jnp.float32)
    m3 = StyleLoss(tf3)
    out3 = jax.block_until_ready(m3(x3))
    l3 = float(jax.block_until_ready(m3.loss))
    assert bool(jnp.allclose(out3, x3))
    assert np.allclose(l3, loss_ref(x3, tf3), rtol=1e-3, atol=1e-10), \
        f"row-tiled loss mismatch: {l3} vs {loss_ref(x3, tf3)}"

    # 3b) Row-tiled + forced multi-step K (tail mask in the tiled kernels).
    _, l3b = style_loss_forward(x3, m3.target, _max_tk=128)
    l3b = float(jax.block_until_ready(l3b))
    assert np.allclose(l3b, loss_ref(x3, tf3), rtol=1e-3, atol=1e-10), \
        f"row-tiled masked loss mismatch: {l3b} vs {loss_ref(x3, tf3)}"

    print("KERNEL_OK")
</pallas_src>

<mosaic_0001>
module attributes {stable_mosaic.version = 11 : i64} {
  func.func @_gram_kernel(%arg0: i32, %arg1: memref<8x256xf32, #tpu.memory_space<vmem>>, %arg2: memref<8x8xf32, #tpu.memory_space<vmem>>) attributes {dimension_semantics = [#tpu.dimension_semantics<arbitrary>], iteration_bounds = array<i64: 1>, scalar_prefetch = 0 : i64, scratch_operands = 0 : i64, tpu.core_type = #tpu.core_type<tc>, window_params = [{transform_indices = @transform_0, window_bounds = array<i64: 8, 256>}, {pipeline_mode = #tpu.pipeline_mode<synchronous>, transform_indices = @transform_1, window_bounds = array<i64: 8, 8>}]} {
    %c0_i32 = arith.constant 0 : i32
    %0 = arith.cmpi eq, %arg0, %c0_i32 : i32
    %1 = arith.extui %0 : i1 to i32
    %c0_i32_0 = arith.constant 0 : i32
    %2 = arith.cmpi ne, %1, %c0_i32_0 : i32
    scf.if %2 {
      %cst_6 = arith.constant 0.000000e+00 : f32
      %11 = vector.broadcast %cst_6 : f32 to vector<8x8xf32>
      %c0_7 = arith.constant 0 : index
      %c0_8 = arith.constant 0 : index
      %12 = vector.load %arg2[%c0_7, %c0_8] : memref<8x8xf32, #tpu.memory_space<vmem>>, vector<8x8xf32>
      tpu.vector_store %arg2[%c0_7, %c0_8], %11 {strides = array<i32>} : memref<8x8xf32, #tpu.memory_space<vmem>>, vector<8x8xf32>,
    } else {
    }
    %c0 = arith.constant 0 : index
    %c0_1 = arith.constant 0 : index
    %3 = vector.load %arg1[%c0, %c0_1] : memref<8x256xf32, #tpu.memory_space<vmem>>, vector<8x256xf32>
    %cst = arith.constant dense<0.000000e+00> : vector<8x8xf32>
    %4 = tpu.matmul %3, %3, %cst {dimension_numbers = #tpu.dot_dimension_numbers<[1], [1], [0], [0], [0, 0, 1, 0], [], []>, precision = #tpu.contract_precision<fp32>} : vector<8x256xf32>, vector<8x256xf32>, vector<8x8xf32> -> vector<8x8xf32>
    %c0_i32_2 = arith.constant 0 : i32
    %5 = arith.cmpi slt, %arg0, %c0_i32_2 : i32
    %6 = arith.extui %5 : i1 to i32
    %c0_i32_3 = arith.constant 0 : i32
    %7 = arith.cmpi ne, %6, %c0_i32_3 : i32
    scf.if %7 {
      %c0_6 = arith.constant 0 : index
      %c0_7 = arith.constant 0 : index
      %11 = vector.load %arg2[%c0_6, %c0_7] : memref<8x8xf32, #tpu.memory_space<vmem>>, vector<8x8xf32>
      %12 = arith.addf %11, %4 : vector<8x8xf32>
      %c0_8 = arith.constant 0 : index
      %c0_9 = arith.constant 0 : index
      %13 = vector.load %arg2[%c0_8, %c0_9] : memref<8x8xf32, #tpu.memory_space<vmem>>, vector<8x8xf32>
      tpu.vector_store %arg2[%c0_8, %c0_9], %12 {strides = array<i32>} : memref<8x8xf32, #tpu.memory_space<vmem>>, vector<8x8xf32>,
    } else {
    }
    %c0_i32_4 = arith.constant 0 : i32
    %8 = arith.cmpi eq, %arg0, %c0_i32_4 : i32
    %9 = arith.extui %8 : i1 to i32
    %c0_i32_5 = arith.constant 0 : i32
    %10 = arith.cmpi ne, %9, %c0_i32_5 : i32
    scf.if %10 {
      %c0_6 = arith.constant 0 : index
      %c0_7 = arith.constant 0 : index
      %11 = vector.load %arg2[%c0_6, %c0_7] : memref<8x8xf32, #tpu.memory_space<vmem>>, vector<8x8xf32>
      %12 = arith.addf %11, %4 : vector<8x8xf32>
      %cst_8 = arith.constant 4.8828125E-4 : f32
      %13 = vector.broadcast %cst_8 : f32 to vector<8x8xf32>
      %14 = arith.mulf %12, %13 : vector<8x8xf32>
      %c0_9 = arith.constant 0 : index
      %c0_10 = arith.constant 0 : index
      %15 = vector.load %arg2[%c0_9, %c0_10] : memref<8x8xf32, #tpu.memory_space<vmem>>, vector<8x8xf32>
      tpu.vector_store %arg2[%c0_9, %c0_10], %14 {strides = array<i32>} : memref<8x8xf32, #tpu.memory_space<vmem>>, vector<8x8xf32>,
    } else {
    }
    return
  }
  func.func @transform_0(%arg0: i32) -> (i32, i32) {
    %c0_i32 = arith.constant 0 : i32
    %c0_i32_0 = arith.constant 0 : i32
    return %c0_i32, %arg0 : i32, i32
  }
  func.func @transform_1(%arg0: i32) -> (i32, i32) {
    %c0_i32 = arith.constant 0 : i32
    %c0_i32_0 = arith.constant 0 : i32
    %c0_i32_1 = arith.constant 0 : i32
    return %c0_i32, %c0_i32_0 : i32, i32
  }
}

</mosaic_0001>

<bundles_post_ra>
// kernel: tpu_custom_call.1
= control target key start
LH: loop header
LB: loop body
LE: loop exit
PB: predicated region body
PF: predicated region fallthrough
CT: control target
= control target key end

     0   :  { %6 = vsyncpa [#allocation3], 0  ;;  %s432_s0 = inlined_call_operand.hbm [shape: f32[8,256], index: 0, kind: input, shape index: {}]   ;;  %s433_s1 = inlined_call_operand.hbm [shape: f32[8,8], index: 1, kind: output, shape index: {}]  }
   0x1   :  { %7 = vsyncpa [#allocation4], 0  ;;  %s13_s8 = sshll.u32 %s432_s0, 4  ;;  %s411_s9 = smov [#allocation2]   ;;  %s14_s8 = int_to_ptr.hbm [resolvable:$true] %s13_s8 }
   0x2   :  { %s15_s10 = sshll.u32 %s411_s9, 4  ;;  %s16_s10 = int_to_ptr.vmem [resolvable:$true] %s15_s10 }
   0x3   :  { %18 = dma.hbm_to_vmem [thread:$0]  %s14_s8, 256, %s16_s10, [#allocation3]  }
   0x4   :  { %407 = dma.done.wait [#allocation3], 256  }
   0x5   :  { %408 = vsyncadd [#allocation3], 4294967040  ;;  %vm27_vm0 = vcmask 64512   ;;  %v412_v0 = vmov 0.0   ;;  %v29_v1 = vld [vmem:[#allocation2] sm:$0xff]  ;;  %v30_v2 = vld [vmem:[#allocation2 + $0x8] sm:$0xff] }
   0x6   :  { %28 = vst.msk [vmem:[#allocation5] sm:$0xff] %vm27_vm0, %v412_v0  ;;  %v46_v3 = vand.u32 4294901760, %v29_v1  ;;  %v192_v4 = vand.u32 4294901760, %v30_v2  ;;  %s413_s0 = smov [#allocation5]   ;;  %s346_s14 = sshll.u32 %s433_s1, 4  ;;  %s347_s14 = int_to_ptr.hbm [resolvable:$true] %s346_s14 }
   0x7   :  { %s344_s11 = sshll.u32 %s413_s0, 4  ;;  %s345_s11 = int_to_ptr.vmem [resolvable:$true] %s344_s11 }
   0x8   :  { %v49_v5 = vsub.f32 %v29_v1, %v46_v3  ;;  %47 = vmatpush.xpose.msra.mxu0 %v46_v3  ;;  %123 = vmatpush.xpose.msra.mxu3 %v46_v3  ;;  %v195_v6 = vsub.f32 %v30_v2, %v192_v4 }
   0xa   :  { %100 = vmatpush.xpose.msra.mxu2 %v49_v5  ;;  %v50_v7 = vand.u32 4294901760, %v49_v5  ;;  %v196_v8 = vand.u32 4294901760, %v195_v6 }
   0xc   :  { %v51_v9 = vsub.f32 %v49_v5, %v50_v7  ;;  %127 = vmatmul.f32.vlgmr.msra.gmra.mxu3 %v50_v7  ;;  %149 = vmatpush.xpose.msrb.mxu0 %v50_v7  ;;  %v197_v10 = vsub.f32 %v195_v6, %v196_v8 }
   0xd   :  { %103 = vmatmul.f32.vlgmr.msra.gmra.mxu2 %v49_v5  ;;  %v334_v35 = vld [vmem:[#allocation5] sm:$0xff] }
   0xe   :  { %193 = vmatpush.xpose.msrb.mxu2 %v192_v4  ;;  %v52_v11 = vand.u32 4294901760, %v51_v9  ;;  %v198_v12 = vand.u32 4294901760, %v197_v10 }
  0x10   :  { %77 = vmatpush.xpose.msra.mxu1 %v52_v11  ;;  %53 = vmatmul.f32.vlgmr.msra.gmra.mxu0 %v52_v11 }
  0x11   :  { %223 = vmatpush.xpose.msrb.mxu3 %v198_v12  ;;  %246 = vmatpush.xpose.msra.mxu0 %v195_v6 }
  0x12   :  { %295 = vmatpush.xpose.msra.mxu2 %v196_v8 }
  0x13   :  { %79 = vmatmul.f32.vlgmr.msra.gmra.mxu1 %v46_v3 }
  0x14   :  { %171 = vmatpush.xpose.msrb.mxu1 %v46_v3  ;;  %225 = vmatmul.f32.vlgmr.msrb.gmra.mxu3 %v192_v4 }
  0x15   :  { %317 = vmatpush.xpose.msra.mxu3 %v192_v4  ;;  %199 = vmatmul.f32.vlgmr.msrb.gmra.mxu2 %v198_v12 }
  0x18   :  { %269 = vmatpush.xpose.msra.mxu1 %v192_v4  ;;  %151 = vmatmul.f32.vlgmr.msrb.gmra.mxu0 %v46_v3 }
  0x1b   :  { %173 = vmatmul.f32.vlgmr.msrb.gmra.mxu1 %v46_v3 }
  0x1c   :  { %319 = vmatmul.f32.vlgmr.msra.gmra.mxu3 %v192_v4 }
  0x1d   :  { %297 = vmatmul.f32.vlgmr.msra.gmra.mxu2 %v192_v4 }
  0x20   :  { %249 = vmatmul.f32.vlgmr.msra.gmra.mxu0 %v195_v6 }
  0x23   :  { %273 = vmatmul.f32.vlgmr.msra.gmra.mxu1 %v196_v8 }
  0x8d   :  { %v54_v13 = vpop.f32.mrf.mxu0 }
  0x8f   :  { %v128_v14 = vpop.f32.mrf.mxu3 }
  0x90   :  { %v80_v15 = vpop.f32.mrf.mxu1  ;;  %v104_v16 = vpop.f32.mrf.mxu2 }
  0x91   :  { %v81_v17 = vadd.f32 %v80_v15, %v54_v13 }
  0x93   :  { %v105_v18 = vadd.f32 %v104_v16, %v81_v17 }
  0x95   :  { %v129_v19 = vadd.f32 %v128_v14, %v105_v18  ;;  %v152_v20 = vpop.f32.mrf.mxu0 }
  0x97   :  { %v153_v21 = vadd.f32 %v152_v20, %v129_v19  ;;  %v226_v22 = vpop.f32.mrf.mxu3 }
  0x98   :  { %v174_v23 = vpop.f32.mrf.mxu1  ;;  %v200_v24 = vpop.f32.mrf.mxu2 }
  0x99   :  { %v175_v25 = vadd.f32 %v174_v23, %v153_v21 }
  0x9b   :  { %v201_v26 = vadd.f32 %v200_v24, %v175_v25 }
  0x9d   :  { %v227_v27 = vadd.f32 %v226_v22, %v201_v26  ;;  %v250_v28 = vpop.f32.mrf.mxu0 }
  0x9f   :  { %v251_v29 = vadd.f32 %v250_v28, %v227_v27  ;;  %v320_v33 = vpop.f32.mrf.mxu3 }
  0xa0   :  { %v274_v30 = vpop.f32.mrf.mxu1  ;;  %v298_v31 = vpop.f32.mrf.mxu2 }
  0xa1   :  { %v275_v32 = vadd.f32 %v274_v30, %v251_v29 }
  0xa3   :  { %v299_v34 = vadd.f32 %v298_v31, %v275_v32 }
  0xa5   :  { %v321_v36 = vadd.f32 %v320_v33, %v299_v34 }
  0xa7   :  { %v335_v37 = vadd.f32 %v334_v35, %v321_v36 }
  0xa9   :  { %v336_v38 = vmul.f32 0.00048828125, %v335_v37 }
  0xab   :  { %338 = vst.msk [vmem:[#allocation5] sm:$0xff] %vm27_vm0, %v336_v38 }
  0xac   :  { %349 = dma.vmem_to_hbm [thread:$0]  %s345_s11, 128, %s347_s14, [#allocation4]  }
  0xad   :  { %409 = dma.done.wait [#allocation4], 128  }
  0xae   :  { %410 = vsyncadd [#allocation4], 4294967168 }
  0xaf   :  { %354 = vsyncpa [#allocation3], 1 }
  0xb0   :  { %355 = vsyncpa [#allocation4], 1 }

</bundles_post_ra>
